<compile_context>
chip_gen: v6e
topology: v6e:2x2x1
jax: 0.10.0
libtpu: 0.0.40
codegen_flags: <defaults>
</compile_context>

<pallas_src>
import math
import functools

import jax
import jax.numpy as jnp
from jax.experimental import pallas as pl
from jax.experimental.pallas import tpu as pltpu


def _apply_node_func_kernel(h_ref, w1_ref, b1_ref, w2_ref, b2_ref,
                            g_ref, beta_ref, o_ref, *, eps):
    # One grid step == ROW_TILE nodes (rows). Everything is position-wise, so rows
    # from the whole graph/batch are processed as a flat slab.
    x = h_ref[...].astype(jnp.float32)                                    # (TM, D_in)

    # fn: Linear-1 with BatchNorm already folded into (w1, b1), then ReLU.
    z = jnp.dot(x, w1_ref[...], preferred_element_type=jnp.float32) + b1_ref[...]
    z = jnp.maximum(z, 0.0)

    # fn: Linear-2.
    y = jnp.dot(z, w2_ref[...], preferred_element_type=jnp.float32) + b2_ref[...]

    # LayerNorm over the feature dim (numerically-stable centered variance).
    mu = jnp.mean(y, axis=-1, keepdims=True)
    d = y - mu
    var = jnp.mean(d * d, axis=-1, keepdims=True)
    y = d * jax.lax.rsqrt(var + eps) * g_ref[...] + beta_ref[...]

    # Final ReLU.
    o_ref[...] = jnp.maximum(y, 0.0).astype(o_ref.dtype)


def _pick_row_tile(m, *, max_tile=512, min_tile=8):
    """Big tiles amortize the ~0.35us/step pipeline overhead; keep >=2 grid steps
    when possible so the 'parallel' axis can be split across TensorCores."""
    half = -(-m // 2)                                  # ceil(m / 2)
    tile = ((half + min_tile - 1) // min_tile) * min_tile
    return max(min_tile, min(max_tile, tile))


def init_params(key, input_dim, hidden_dim, output_dim):
    """Deterministic PyTorch-style init; BatchNorm running stats kept explicitly."""
    ks = jax.random.split(key, 8)

    def lin(kw, kb, fan_in, fan_out):
        bound = 1.0 / math.sqrt(fan_in)
        w = jax.random.uniform(kw, (fan_in, fan_out), jnp.float32, -bound, bound)
        b = jax.random.uniform(kb, (1, fan_out), jnp.float32, -bound, bound)
        return w, b

    w1, b1 = lin(ks[0], ks[1], input_dim, hidden_dim)
    w2, b2 = lin(ks[2], ks[3], hidden_dim, output_dim)

    # BatchNorm1d in eval mode: y = (x - mean) / sqrt(var + eps) * gamma + beta,
    # pre-reduced to a per-feature affine (non-trivial stats so the fold is exercised).
    bn_gamma = jax.random.uniform(ks[4], (1, hidden_dim), jnp.float32, 0.5, 1.5)
    bn_beta = jax.random.uniform(ks[5], (1, hidden_dim), jnp.float32, -0.5, 0.5)
    run_mean = jax.random.uniform(ks[6], (1, hidden_dim), jnp.float32, -0.5, 0.5)
    run_var = jax.random.uniform(ks[7], (1, hidden_dim), jnp.float32, 0.5, 1.5)
    bn_scale = bn_gamma / jnp.sqrt(run_var + 1e-5)
    bn_shift = bn_beta - run_mean * bn_scale

    ln_gamma = jnp.ones((1, output_dim), jnp.float32)
    ln_beta = jnp.zeros((1, output_dim), jnp.float32)
    return dict(w1=w1, b1=b1, bn_scale=bn_scale, bn_shift=bn_shift,
                w2=w2, b2=b2, ln_gamma=ln_gamma, ln_beta=ln_beta)


def apply_node_func(h, params, *, row_tile=None, eps=1e-5):
    """h: (num_nodes, input_dim) float32 -> (num_nodes, output_dim) float32."""
    M, D_in = h.shape
    D_out = params["w2"].shape[1]

    # Fold the eval-mode BatchNorm affine into Linear-1 (param-sized op outside the
    # kernel; the node features themselves are never pre-scaled).
    w1f = params["w1"] * params["bn_scale"]                    # (D_in, H) * (1, H)
    b1f = params["b1"] * params["bn_scale"] + params["bn_shift"]

    if row_tile is None:
        row_tile = _pick_row_tile(M)

    # Pad the node dimension to a multiple of the row tile (padded rows are dropped).
    num_tiles = pl.cdiv(M, row_tile)
    M_pad = num_tiles * row_tile
    if M_pad != M:
        h = jnp.pad(h, ((0, M_pad - M), (0, 0)))

    weights = [w1f, b1f, params["w2"], params["b2"],
               params["ln_gamma"], params["ln_beta"]]

    in_specs = [pl.BlockSpec((row_tile, D_in), lambda i: (i, 0))]
    # Tiny 2-D weights with constant index maps stay resident across grid steps.
    in_specs += [pl.BlockSpec(w.shape, lambda i: (0, 0)) for w in weights]
    out_spec = pl.BlockSpec((row_tile, D_out), lambda i: (i, 0))

    kernel = functools.partial(_apply_node_func_kernel, eps=eps)

    out = pl.pallas_call(
        kernel,
        out_shape=jax.ShapeDtypeStruct((M_pad, D_out), jnp.float32),
        grid=(num_tiles,),
        in_specs=in_specs,
        out_specs=out_spec,
        compiler_params=pltpu.CompilerParams(
            dimension_semantics=("parallel",)),
    )(h, *weights)

    return out[:M]


def _reference(h, params, eps=1e-5):
    """Pure-JAX reference of ApplyNodeFunc with the same fn (BN applied explicitly)."""
    z = h @ params["w1"] + params["b1"]
    z = z * params["bn_scale"] + params["bn_shift"]
    z = jax.nn.relu(z)
    y = z @ params["w2"] + params["b2"]
    mu = jnp.mean(y, axis=-1, keepdims=True)
    var = jnp.mean((y - mu) ** 2, axis=-1, keepdims=True)
    y = (y - mu) * jax.lax.rsqrt(var + eps) * params["ln_gamma"] + params["ln_beta"]
    return jax.nn.relu(y)


if __name__ == "__main__":
    # Small shapes consistent with the module: a flat batch of graph nodes.
    num_nodes = 256          # -> 2 row tiles of 128 (keeps both v7x TCs busy)
    input_dim = 16
    hidden_dim = 32
    output_dim = 32

    key = jax.random.PRNGKey(0)
    k_x, k_p = jax.random.split(key)
    h = jax.random.normal(k_x, (num_nodes, input_dim), jnp.float32)
    params = init_params(k_p, input_dim, hidden_dim, output_dim)

    out = apply_node_func(h, params)
    out = jax.block_until_ready(out)

    ref = _reference(h, params)
    assert out.shape == (num_nodes, output_dim)
    assert jnp.allclose(out, ref, atol=1e-4, rtol=1e-4), "mismatch vs JAX reference"

    print("KERNEL_OK")
</pallas_src>

<mosaic_0001>
module attributes {stable_mosaic.version = 11 : i64} {
  func.func @_apply_node_func_kernel(%arg0: i32, %arg1: memref<128x16xf32, #tpu.memory_space<vmem>>, %arg2: memref<16x32xf32, #tpu.memory_space<vmem>>, %arg3: memref<1x32xf32, #tpu.memory_space<vmem>>, %arg4: memref<32x32xf32, #tpu.memory_space<vmem>>, %arg5: memref<1x32xf32, #tpu.memory_space<vmem>>, %arg6: memref<1x32xf32, #tpu.memory_space<vmem>>, %arg7: memref<1x32xf32, #tpu.memory_space<vmem>>, %arg8: memref<128x32xf32, #tpu.memory_space<vmem>>) attributes {dimension_semantics = [#tpu.dimension_semantics<parallel>], iteration_bounds = array<i64: 2>, scalar_prefetch = 0 : i64, scratch_operands = 0 : i64, tpu.core_type = #tpu.core_type<tc>, window_params = [{transform_indices = @transform_0, window_bounds = array<i64: 128, 16>}, {pipeline_mode = #tpu.pipeline_mode<synchronous>, transform_indices = @transform_1, window_bounds = array<i64: 16, 32>}, {pipeline_mode = #tpu.pipeline_mode<synchronous>, transform_indices = @transform_2, window_bounds = array<i64: 1, 32>}, {pipeline_mode = #tpu.pipeline_mode<synchronous>, transform_indices = @transform_3, window_bounds = array<i64: 32, 32>}, {pipeline_mode = #tpu.pipeline_mode<synchronous>, transform_indices = @transform_4, window_bounds = array<i64: 1, 32>}, {pipeline_mode = #tpu.pipeline_mode<synchronous>, transform_indices = @transform_5, window_bounds = array<i64: 1, 32>}, {pipeline_mode = #tpu.pipeline_mode<synchronous>, transform_indices = @transform_6, window_bounds = array<i64: 1, 32>}, {transform_indices = @transform_7, window_bounds = array<i64: 128, 32>}]} {
    %c0 = arith.constant 0 : index
    %c0_0 = arith.constant 0 : index
    %0 = vector.load %arg1[%c0, %c0_0] : memref<128x16xf32, #tpu.memory_space<vmem>>, vector<128x16xf32>
    %c0_1 = arith.constant 0 : index
    %c0_2 = arith.constant 0 : index
    %1 = vector.load %arg2[%c0_1, %c0_2] : memref<16x32xf32, #tpu.memory_space<vmem>>, vector<16x32xf32>
    %cst = arith.constant dense<0.000000e+00> : vector<128x32xf32>
    %2 = tpu.matmul %0, %1, %cst {dimension_numbers = #tpu.dot_dimension_numbers<[1], [0], [0], [1], [0, 0, 1, 1], [], []>} : vector<128x16xf32>, vector<16x32xf32>, vector<128x32xf32> -> vector<128x32xf32>
    %c0_3 = arith.constant 0 : index
    %c0_4 = arith.constant 0 : index
    %3 = vector.load %arg3[%c0_3, %c0_4] : memref<1x32xf32, #tpu.memory_space<vmem>>, vector<1x32xf32>
    %4 = vector.broadcast %3 : vector<1x32xf32> to vector<128x32xf32>
    %5 = arith.addf %2, %4 : vector<128x32xf32>
    %cst_5 = arith.constant 0.000000e+00 : f32
    %6 = vector.broadcast %cst_5 : f32 to vector<128x32xf32>
    %7 = arith.maximumf %5, %6 : vector<128x32xf32>
    %c0_6 = arith.constant 0 : index
    %c0_7 = arith.constant 0 : index
    %8 = vector.load %arg4[%c0_6, %c0_7] : memref<32x32xf32, #tpu.memory_space<vmem>>, vector<32x32xf32>
    %cst_8 = arith.constant dense<0.000000e+00> : vector<128x32xf32>
    %9 = tpu.matmul %7, %8, %cst_8 {dimension_numbers = #tpu.dot_dimension_numbers<[1], [0], [0], [1], [0, 0, 1, 1], [], []>} : vector<128x32xf32>, vector<32x32xf32>, vector<128x32xf32> -> vector<128x32xf32>
    %c0_9 = arith.constant 0 : index
    %c0_10 = arith.constant 0 : index
    %10 = vector.load %arg5[%c0_9, %c0_10] : memref<1x32xf32, #tpu.memory_space<vmem>>, vector<1x32xf32>
    %11 = vector.broadcast %10 : vector<1x32xf32> to vector<128x32xf32>
    %12 = arith.addf %9, %11 : vector<128x32xf32>
    %cst_11 = arith.constant dense<0.000000e+00> : vector<128xf32>
    %13 = vector.multi_reduction <add>, %12, %cst_11 [1] : vector<128x32xf32> to vector<128xf32>
    %14 = vector.shape_cast %13 : vector<128xf32> to vector<128x1xf32>
    %cst_12 = arith.constant 3.200000e+01 : f32
    %15 = vector.broadcast %cst_12 : f32 to vector<128x1xf32>
    %16 = arith.divf %14, %15 : vector<128x1xf32>
    %17 = vector.broadcast %16 : vector<128x1xf32> to vector<128x32xf32>
    %18 = arith.subf %12, %17 : vector<128x32xf32>
    %19 = arith.mulf %18, %18 : vector<128x32xf32>
    %cst_13 = arith.constant dense<0.000000e+00> : vector<128xf32>
    %20 = vector.multi_reduction <add>, %19, %cst_13 [1] : vector<128x32xf32> to vector<128xf32>
    %21 = vector.shape_cast %20 : vector<128xf32> to vector<128x1xf32>
    %cst_14 = arith.constant 3.200000e+01 : f32
    %22 = vector.broadcast %cst_14 : f32 to vector<128x1xf32>
    %23 = arith.divf %21, %22 : vector<128x1xf32>
    %cst_15 = arith.constant 9.99999974E-6 : f32
    %24 = vector.broadcast %cst_15 : f32 to vector<128x1xf32>
    %25 = arith.addf %23, %24 : vector<128x1xf32>
    %26 = math.rsqrt %25 : vector<128x1xf32>
    %27 = vector.broadcast %26 : vector<128x1xf32> to vector<128x32xf32>
    %28 = arith.mulf %18, %27 : vector<128x32xf32>
    %c0_16 = arith.constant 0 : index
    %c0_17 = arith.constant 0 : index
    %29 = vector.load %arg6[%c0_16, %c0_17] : memref<1x32xf32, #tpu.memory_space<vmem>>, vector<1x32xf32>
    %30 = vector.broadcast %29 : vector<1x32xf32> to vector<128x32xf32>
    %31 = arith.mulf %28, %30 : vector<128x32xf32>
    %c0_18 = arith.constant 0 : index
    %c0_19 = arith.constant 0 : index
    %32 = vector.load %arg7[%c0_18, %c0_19] : memref<1x32xf32, #tpu.memory_space<vmem>>, vector<1x32xf32>
    %33 = vector.broadcast %32 : vector<1x32xf32> to vector<128x32xf32>
    %34 = arith.addf %31, %33 : vector<128x32xf32>
    %cst_20 = arith.constant 0.000000e+00 : f32
    %35 = vector.broadcast %cst_20 : f32 to vector<128x32xf32>
    %36 = arith.maximumf %34, %35 : vector<128x32xf32>
    %c0_21 = arith.constant 0 : index
    %c0_22 = arith.constant 0 : index
    %37 = vector.load %arg8[%c0_21, %c0_22] : memref<128x32xf32, #tpu.memory_space<vmem>>, vector<128x32xf32>
    tpu.vector_store %arg8[%c0_21, %c0_22], %36 {strides = array<i32>} : memref<128x32xf32, #tpu.memory_space<vmem>>, vector<128x32xf32>,
    return
  }
  func.func @transform_0(%arg0: i32) -> (i32, i32) {
    %c0_i32 = arith.constant 0 : i32
    %c0_i32_0 = arith.constant 0 : i32
    return %arg0, %c0_i32 : i32, i32
  }
  func.func @transform_1(%arg0: i32) -> (i32, i32) {
    %c0_i32 = arith.constant 0 : i32
    %c0_i32_0 = arith.constant 0 : i32
    %c0_i32_1 = arith.constant 0 : i32
    return %c0_i32, %c0_i32_0 : i32, i32
  }
  func.func @transform_2(%arg0: i32) -> (i32, i32) {
    %c0_i32 = arith.constant 0 : i32
    %c0_i32_0 = arith.constant 0 : i32
    %c0_i32_1 = arith.constant 0 : i32
    return %c0_i32, %c0_i32_0 : i32, i32
  }
  func.func @transform_3(%arg0: i32) -> (i32, i32) {
    %c0_i32 = arith.constant 0 : i32
    %c0_i32_0 = arith.constant 0 : i32
    %c0_i32_1 = arith.constant 0 : i32
    return %c0_i32, %c0_i32_0 : i32, i32
  }
  func.func @transform_4(%arg0: i32) -> (i32, i32) {
    %c0_i32 = arith.constant 0 : i32
    %c0_i32_0 = arith.constant 0 : i32
    %c0_i32_1 = arith.constant 0 : i32
    return %c0_i32, %c0_i32_0 : i32, i32
  }
  func.func @transform_5(%arg0: i32) -> (i32, i32) {
    %c0_i32 = arith.constant 0 : i32
    %c0_i32_0 = arith.constant 0 : i32
    %c0_i32_1 = arith.constant 0 : i32
    return %c0_i32, %c0_i32_0 : i32, i32
  }
  func.func @transform_6(%arg0: i32) -> (i32, i32) {
    %c0_i32 = arith.constant 0 : i32
    %c0_i32_0 = arith.constant 0 : i32
    %c0_i32_1 = arith.constant 0 : i32
    return %c0_i32, %c0_i32_0 : i32, i32
  }
  func.func @transform_7(%arg0: i32) -> (i32, i32) {
    %c0_i32 = arith.constant 0 : i32
    %c0_i32_0 = arith.constant 0 : i32
    return %arg0, %c0_i32 : i32, i32
  }
}

</mosaic_0001>

<bundles_post_ra>
// kernel: tpu_custom_call.1
= control target key start
LH: loop header
LB: loop body
LE: loop exit
PB: predicated region body
PF: predicated region fallthrough
CT: control target
= control target key end

     0   :  { %s1298_s24 = smov 0   ;;  %s1648_s0 = inlined_call_operand.vmem [shape: f32[256,16], index: 0, kind: input, shape index: {}]   ;;  %s1649_s1 = inlined_call_operand.vmem [shape: f32[16,32], index: 1, kind: input, shape index: {}]   ;;  %s1650_s2 = inlined_call_operand.vmem [shape: f32[1,32], index: 2, kind: input, shape index: {}]   ;;  %s1651_s3 = inlined_call_operand.vmem [shape: f32[32,32], index: 3, kind: input, shape index: {}]   ;;  %s1652_s4 = inlined_call_operand.vmem [shape: f32[1,32], index: 4, kind: input, shape index: {}]   ;;  %s1653_s5 = inlined_call_operand.vmem [shape: f32[1,32], index: 5, kind: input, shape index: {}]   ;;  %s1654_s6 = inlined_call_operand.vmem [shape: f32[1,32], index: 6, kind: input, shape index: {}]   ;;  %s1655_s7 = inlined_call_operand.vmem [shape: f32[256,32], index: 7, kind: output, shape index: {}]  }
   0x1 LB: > { %s1065_s25 = sadd.s32 4294967295, %s1256_s24   ;;  %p1069_p0 = scmp.ge.s32.totalorder %s1256_s24, 1  ;;  %s1256_s24 = sphi %s1298_s24, %s17_s24  }
   0x2   : > { %p238_p1 = scmp.lt.s32.totalorder %s1256_s24, 3 }
   0x4   : > { %p239_p2 = pnand %p1069_p0, %p238_p1 }
   0x5   : > { %s1070_s30 = sshll.u32 (!%p239_p2), %s1065_s25, 4 }
   0x6   : > { %242 = sbr.rel (%p239_p2) target bundleno = 755 (0x2f3), region = 48  ;;  %p271_p3 = scmp.lt.s32.totalorder (!%p239_p2), %s1070_s30, 31 }
   0xb   : > { %v299_v0 = vld [vmem:[%s1649_s1 + $0x8] sm:$0xff]  ;;  %v298_v1 = vld [vmem:[%s1649_s1] sm:$0xff]  ;;  %s1657_s30 = smov (!%p271_p3, %s1070_s30), 31  ;;  %vm307_vm0 = vcmask 130048   ;;  %v520_v18 = vld [vmem:[%s1651_s3 + $0x18] sm:$0xff]  ;;  %vm528_vm1 = vcmask 261120  }
   0xc   : > { %1150 = vmatprep.subr.mxu0 %v299_v0  ;;  %s1071_s8 = sshll.u32 %s1657_s30, 3  ;;  %1178 = vmatprep.subr.mxu1 %v520_v18  ;;  %v519_v19 = vld [vmem:[%s1651_s3 + $0x10] sm:$0xff]  ;;  %v518_v20 = vld [vmem:[%s1651_s3 + $0x8] sm:$0xff]  ;;  %v517_v21 = vld [vmem:[%s1651_s3] sm:$0xff] }
   0xd   : > { %1151 = vmatpush3.msra.mxu0 %v299_v0  ;;  %s1320_s11 = scalar_lea.vmem %s1648_s0, %s1071_s8  ;;  %1179 = vmatpush3.msra.mxu1 %v520_v18  ;;  %v1074_v22 = vld [vmem:[%s1650_s2] ss:$0 sm:$0xff]  ;;  %s1567_s10 = scalar_lea.vmem %s1655_s7, %s1071_s8 }
   0xe   : > { %1152 = vmatprep.subr.mxu0 %v298_v1  ;;  %v282_v2 = vld [vmem:[%s1320_s11] sm:$0xff]  ;;  %v283_v3 = vld [vmem:[%s1320_s11 + $0x8] sm:$0xff]  ;;  %v284_v4 = vld [vmem:[%s1320_s11 + $0x10] sm:$0xff]  ;;  %1180 = vmatprep.subr.mxu1 %v519_v19 }
   0xf   : > { %1153 = vmatpush3.msra.mxu0 %v298_v1  ;;  %1154 = vmatprep.mubr.msk.f32.mxu0 %vm307_vm0, %v282_v2  ;;  %v285_v5 = vld [vmem:[%s1320_s11 + $0x18] sm:$0xff]  ;;  %v286_v6 = vld [vmem:[%s1320_s11 + $0x20] sm:$0xff]  ;;  %v287_v7 = vld [vmem:[%s1320_s11 + $0x28] sm:$0xff] }
  0x10   : > { %1155 = vmatmul.mubr.msk.f32.vlgmr.msra.gmra.mxu0 %vm307_vm0, %v283_v3  ;;  %v288_v8 = vld [vmem:[%s1320_s11 + $0x30] sm:$0xff]  ;;  %v289_v9 = vld [vmem:[%s1320_s11 + $0x38] sm:$0xff]  ;;  %v290_v10 = vld [vmem:[%s1320_s11 + $0x40] sm:$0xff]  ;;  %1181 = vmatpush3.msra.mxu1 %v519_v19 }
  0x11   : > { %1157 = vmatprep.mubr.msk.f32.mxu0 %vm307_vm0, %v284_v4  ;;  %v291_v11 = vld [vmem:[%s1320_s11 + $0x48] sm:$0xff]  ;;  %v292_v12 = vld [vmem:[%s1320_s11 + $0x50] sm:$0xff]  ;;  %v293_v13 = vld [vmem:[%s1320_s11 + $0x58] sm:$0xff]  ;;  %1182 = vmatprep.subr.mxu1 %v518_v20 }
  0x12   : > { %v294_v14 = vld [vmem:[%s1320_s11 + $0x60] sm:$0xff]  ;;  %v295_v15 = vld [vmem:[%s1320_s11 + $0x68] sm:$0xff]  ;;  %v296_v16 = vld [vmem:[%s1320_s11 + $0x70] sm:$0xff]  ;;  %1183 = vmatpush3.msra.mxu1 %v518_v20 }
  0x13   : > { %v297_v17 = vld [vmem:[%s1320_s11 + $0x78] sm:$0xff]  ;;  %1184 = vmatprep.subr.mxu1 %v517_v21 }
  0x14   : > { %1158 = vmatmul.mubr.msk.f32.gmra.mxu0 %vm307_vm0, %v285_v5  ;;  %1185 = vmatpush3.msra.mxu1 %v517_v21 }
  0x15   : > { %1160 = vmatprep.mubr.msk.f32.mxu0 %vm307_vm0, %v286_v6 }
  0x18   : > { %1161 = vmatmul.mubr.msk.f32.gmra.mxu0 %vm307_vm0, %v287_v7  ;;  %v1091_v7 = vld [vmem:[%s1652_s4] ss:$0 sm:$0xff] }
  0x19   : > { %1163 = vmatprep.mubr.msk.f32.mxu0 %vm307_vm0, %v288_v8 }
  0x1c   : > { %1164 = vmatmul.mubr.msk.f32.gmra.mxu0 %vm307_vm0, %v289_v9 }
  0x1d   : > { %1166 = vmatprep.mubr.msk.f32.mxu0 %vm307_vm0, %v290_v10 }
  0x20   : > { %1167 = vmatmul.mubr.msk.f32.gmra.mxu0 %vm307_vm0, %v291_v11 }
  0x21   : > { %1169 = vmatprep.mubr.msk.f32.mxu0 %vm307_vm0, %v292_v12 }
  0x24   : > { %1170 = vmatmul.mubr.msk.f32.gmra.mxu0 %vm307_vm0, %v293_v13 }
  0x25   : > { %1172 = vmatprep.mubr.msk.f32.mxu0 %vm307_vm0, %v294_v14 }
  0x28   : > { %1173 = vmatmul.mubr.msk.f32.gmra.mxu0 %vm307_vm0, %v295_v15 }
  0x29   : > { %1175 = vmatprep.mubr.msk.f32.mxu0 %vm307_vm0, %v296_v16 }
  0x2c   : > { %1176 = vmatmul.mubr.msk.f32.gmra.mxu0 %vm307_vm0, %v297_v17 }
  0xd0   : > { %v1156_v23 = vpop.f32.mrf.mxu0 }
  0xd1   : > { %v428_v24 = vadd.f32 %v1156_v23, %v1074_v22 }
  0xd2   : > { %v422_v25 = vpop.f32.mrf.mxu0 }
  0xd3   : > { %v423_v26 = vadd.f32 %v1074_v22, %v422_v25  ;;  %v502_v29 = vmax.f32 %v428_v24, 0.0 }
  0xd4   : > { %v1159_v27 = vpop.f32.mrf.mxu0 }
  0xd5   : > { %v501_v28 = vmax.f32 %v423_v26, 0.0  ;;  %v438_v30 = vadd.f32 %v1159_v27, %v1074_v22 }
  0xd6   : > { %v432_v31 = vpop.f32.mrf.mxu0 }
  0xd7   : > { %v433_v32 = vadd.f32 %v1074_v22, %v432_v31  ;;  %1186 = vmatprep.mubr.msk.f32.mxu1 %vm528_vm1, %v501_v28  ;;  %v504_v36 = vmax.f32 %v438_v30, 0.0 }
  0xd8   : > { %v1162_v33 = vpop.f32.mrf.mxu0  ;;  %1187 = vmatmul.mubr.msk.f32.vlgmr.msra.gmra.mxu1 %vm528_vm1, %v502_v29 }
  0xd9   : > { %v503_v34 = vmax.f32 %v433_v32, 0.0  ;;  %v448_v35 = vadd.f32 %v1162_v33, %v1074_v22 }
  0xda   : > { %v442_v37 = vpop.f32.mrf.mxu0 }
  0xdb   : > { %v443_v38 = vadd.f32 %v1074_v22, %v442_v37  ;;  %1189 = vmatprep.mubr.msk.f32.mxu1 %vm528_vm1, %v503_v34  ;;  %v506_v39 = vmax.f32 %v448_v35, 0.0 }
  0xdc   : > { %v1165_v40 = vpop.f32.mrf.mxu0  ;;  %1190 = vmatmul.mubr.msk.f32.gmra.mxu1 %vm528_vm1, %v504_v36 }
  0xdd   : > { %v505_v41 = vmax.f32 %v443_v38, 0.0  ;;  %v458_v42 = vadd.f32 %v1165_v40, %v1074_v22 }
  0xde   : > { %v452_v43 = vpop.f32.mrf.mxu0 }
  0xdf   : > { %v453_v44 = vadd.f32 %v1074_v22, %v452_v43  ;;  %1192 = vmatprep.mubr.msk.f32.mxu1 %vm528_vm1, %v505_v41  ;;  %v508_v45 = vmax.f32 %v458_v42, 0.0 }
  0xe0   : > { %v1168_v46 = vpop.f32.mrf.mxu0  ;;  %1193 = vmatmul.mubr.msk.f32.gmra.mxu1 %vm528_vm1, %v506_v39 }
  0xe1   : > { %v507_v47 = vmax.f32 %v453_v44, 0.0  ;;  %v468_v48 = vadd.f32 %v1168_v46, %v1074_v22 }
  0xe2   : > { %v462_v49 = vpop.f32.mrf.mxu0 }
  0xe3   : > { %v463_v50 = vadd.f32 %v1074_v22, %v462_v49  ;;  %1195 = vmatprep.mubr.msk.f32.mxu1 %vm528_vm1, %v507_v47  ;;  %v510_v51 = vmax.f32 %v468_v48, 0.0 }
  0xe4   : > { %v1171_v52 = vpop.f32.mrf.mxu0  ;;  %1196 = vmatmul.mubr.msk.f32.gmra.mxu1 %vm528_vm1, %v508_v45 }
  0xe5   : > { %v509_v53 = vmax.f32 %v463_v50, 0.0  ;;  %v478_v54 = vadd.f32 %v1171_v52, %v1074_v22 }
  0xe6   : > { %v472_v55 = vpop.f32.mrf.mxu0 }
  0xe7   : > { %v473_v56 = vadd.f32 %v1074_v22, %v472_v55  ;;  %1198 = vmatprep.mubr.msk.f32.mxu1 %vm528_vm1, %v509_v53  ;;  %v512_v57 = vmax.f32 %v478_v54, 0.0 }
  0xe8   : > { %v1174_v58 = vpop.f32.mrf.mxu0  ;;  %1199 = vmatmul.mubr.msk.f32.gmra.mxu1 %vm528_vm1, %v510_v51 }
  0xe9   : > { %v511_v59 = vmax.f32 %v473_v56, 0.0  ;;  %v488_v60 = vadd.f32 %v1174_v58, %v1074_v22 }
  0xea   : > { %v482_v61 = vpop.f32.mrf.mxu0 }
  0xeb   : > { %v483_v62 = vadd.f32 %v1074_v22, %v482_v61  ;;  %1201 = vmatprep.mubr.msk.f32.mxu1 %vm528_vm1, %v511_v59  ;;  %v514_v63 = vmax.f32 %v488_v60, 0.0 }
  0xec   : > { %v1177_v0 = vpop.f32.mrf.mxu0  ;;  %1202 = vmatmul.mubr.msk.f32.gmra.mxu1 %vm528_vm1, %v512_v57 }
  0xed   : > { %v513_v1 = vmax.f32 %v483_v62, 0.0  ;;  %v498_v2 = vadd.f32 %v1177_v0, %v1074_v22 }
  0xee   : > { %v492_v3 = vpop.f32.mrf.mxu0 }
  0xef   : > { %v493_v4 = vadd.f32 %v1074_v22, %v492_v3  ;;  %1204 = vmatprep.mubr.msk.f32.mxu1 %vm528_vm1, %v513_v1  ;;  %v516_v5 = vmax.f32 %v498_v2, 0.0 }
  0xf0   : > { %1205 = vmatmul.mubr.msk.f32.gmra.mxu1 %vm528_vm1, %v514_v63 }
  0xf1   : > { %v515_v6 = vmax.f32 %v493_v4, 0.0 }
  0xf3   : > { %1207 = vmatprep.mubr.msk.f32.mxu1 %vm528_vm1, %v515_v6 }
  0xf4   : > { %1208 = vmatmul.mubr.msk.f32.gmra.mxu1 %vm528_vm1, %v516_v5 }
 0x198   : > { %v1188_v8 = vpop.f32.mrf.mxu1 }
 0x199   : > { %v1388_v9 = vadd.f32 %v1188_v8, %v1091_v7 }
 0x19a   : > { %v643_v10 = vpop.f32.mrf.mxu1 }
 0x19b   : > { %v1390_v11 = vadd.f32 %v1091_v7, %v643_v10  ;;  %v725_v12 = vsel %vm528_vm1, %v1388_v9, 0.0 }
 0x19c   : > { %726 = vadd.xlane.f32.xlu0 %v725_v12  ;;  %v1191_v13 = vpop.f32.mrf.mxu1 }
 0x19d   : > { %v1394_v14 = vadd.f32 %v1191_v13, %v1091_v7  ;;  %v722_v18 = vsel %vm528_vm1, %v1390_v11, 0.0 }
 0x19e   : > { %v653_v15 = vpop.f32.mrf.mxu1 }
 0x19f   : > { %v1396_v16 = vadd.f32 %v1091_v7, %v653_v15  ;;  %v731_v17 = vsel %vm528_vm1, %v1394_v14, 0.0 }
 0x1a0   : > { %732 = vadd.xlane.f32.xlu1 %v731_v17  ;;  %v1194_v19 = vpop.f32.mrf.mxu1  ;;  %723 = vadd.xlane.f32.xlu0 %v722_v18 }
 0x1a1   : > { %v1402_v21 = vadd.f32 %v1194_v19, %v1091_v7  ;;  %v728_v23 = vsel %vm528_vm1, %v1396_v16, 0.0 }
 0x1a2   : > { %v663_v20 = vpop.f32.mrf.mxu1 }
 0x1a3   : > { %v1404_v22 = vadd.f32 %v1091_v7, %v663_v20  ;;  %v737_v29 = vsel %vm528_vm1, %v1402_v21, 0.0 }
 0x1a4   : > { %v1197_v24 = vpop.f32.mrf.mxu1  ;;  %729 = vadd.xlane.f32.xlu1 %v728_v23 }
 0x1a5   : > { %v734_v25 = vsel %vm528_vm1, %v1404_v22, 0.0  ;;  %v1410_v27 = vadd.f32 %v1197_v24, %v1091_v7 }
 0x1a6   : > { %v673_v26 = vpop.f32.mrf.mxu1  ;;  %735 = vadd.xlane.f32.xlu0 %v734_v25 }
 0x1a7   : > { %v1412_v28 = vadd.f32 %v1091_v7, %v673_v26  ;;  %v743_v35 = vsel %vm528_vm1, %v1410_v27, 0.0 }
 0x1a8   : > { %v1200_v30 = vpop.f32.mrf.mxu1  ;;  %738 = vadd.xlane.f32.xlu1 %v737_v29 }
 0x1a9   : > { %v740_v31 = vsel %vm528_vm1, %v1412_v28, 0.0  ;;  %v1418_v33 = vadd.f32 %v1200_v30, %v1091_v7 }
 0x1aa   : > { %v683_v32 = vpop.f32.mrf.mxu1  ;;  %741 = vadd.xlane.f32.xlu0 %v740_v31 }
 0x1ab   : > { %v1420_v34 = vadd.f32 %v1091_v7, %v683_v32  ;;  %v749_v41 = vsel %vm528_vm1, %v1418_v33, 0.0 }
 0x1ac   : > { %v1203_v36 = vpop.f32.mrf.mxu1  ;;  %744 = vadd.xlane.f32.xlu1 %v743_v35 }
 0x1ad   : > { %v746_v37 = vsel %vm528_vm1, %v1420_v34, 0.0  ;;  %v1426_v39 = vadd.f32 %v1203_v36, %v1091_v7 }
 0x1ae   : > { %v693_v38 = vpop.f32.mrf.mxu1  ;;  %747 = vadd.xlane.f32.xlu0 %v746_v37 }
 0x1af   : > { %v1428_v40 = vadd.f32 %v1091_v7, %v693_v38  ;;  %v755_v47 = vsel %vm528_vm1, %v1426_v39, 0.0 }
 0x1b0   : > { %v1206_v42 = vpop.f32.mrf.mxu1  ;;  %750 = vadd.xlane.f32.xlu1 %v749_v41 }
 0x1b1   : > { %v752_v43 = vsel %vm528_vm1, %v1428_v40, 0.0  ;;  %v1434_v45 = vadd.f32 %v1206_v42, %v1091_v7 }
 0x1b2   : > { %v703_v44 = vpop.f32.mrf.mxu1  ;;  %753 = vadd.xlane.f32.xlu0 %v752_v43 }
 0x1b3   : > { %v1436_v46 = vadd.f32 %v1091_v7, %v703_v44  ;;  %v761_v53 = vsel %vm528_vm1, %v1434_v45, 0.0 }
 0x1b4   : > { %v1209_v48 = vpop.f32.mrf.mxu1  ;;  %756 = vadd.xlane.f32.xlu1 %v755_v47 }
 0x1b5   : > { %v758_v49 = vsel %vm528_vm1, %v1436_v46, 0.0  ;;  %v1442_v51 = vadd.f32 %v1209_v48, %v1091_v7 }
 0x1b6   : > { %v713_v50 = vpop.f32.mrf.mxu1  ;;  %759 = vadd.xlane.f32.xlu0 %v758_v49 }
 0x1b7   : > { %v1444_v52 = vadd.f32 %v1091_v7, %v713_v50  ;;  %v767_v55 = vsel %vm528_vm1, %v1442_v51, 0.0 }
 0x1b8   : > { %762 = vadd.xlane.f32.xlu1 %v761_v53 }
 0x1b9   : > { %v764_v54 = vsel %vm528_vm1, %v1444_v52, 0.0 }
 0x1ba   : > { %765 = vadd.xlane.f32.xlu0 %v764_v54 }
 0x1bc   : > { %768 = vadd.xlane.f32.xlu1 %v767_v55 }
 0x225   : > { %v727_v56 = vpop.xlane.xlu0 %726 }
 0x226   : > { %v772_v57 = vmul.f32 0.03125, %v727_v56 }
 0x228   : > { %v1453_v58 = vsub.f32 %v1388_v9, %v772_v57 }
 0x229   : > { %v733_v59 = vpop.xlane.xlu1 %732  ;;  %v724_v60 = vpop.xlane.xlu0 %723 }
 0x22a   : > { %v774_v61 = vmul.f32 0.03125, %v733_v59  ;;  %v771_v62 = vmul.f32 0.03125, %v724_v60  ;;  %v804_v63 = vmul.f32 %v1453_v58, %v1453_v58 }
 0x22c   : > { %v1458_v0 = vsub.f32 %v1394_v14, %v774_v61  ;;  %v1461_v1 = vsub.f32 %v1390_v11, %v771_v62  ;;  %v822_v2 = vsel %vm528_vm1, %v804_v63, 0.0 }
 0x22d   : > { %823 = vadd.xlane.f32.xlu1 %v822_v2  ;;  %v730_v3 = vpop.xlane.xlu1 %729 }
 0x22e   : > { %v773_v4 = vmul.f32 0.03125, %v730_v3  ;;  %v806_v5 = vmul.f32 %v1458_v0, %v1458_v0  ;;  %v803_v6 = vmul.f32 %v1461_v1, %v1461_v1 }
 0x22f   : > { %v736_v7 = vpop.xlane.xlu0 %735 }
 0x230   : > { %v1469_v8 = vsub.f32 %v1396_v16, %v773_v4  ;;  %v775_v9 = vmul.f32 0.03125, %v736_v7  ;;  %v828_v10 = vsel %vm528_vm1, %v806_v5, 0.0  ;;  %v819_v11 = vsel %vm528_vm1, %v803_v6, 0.0 }
 0x231   : > { %829 = vadd.xlane.f32.xlu1 %v828_v10  ;;  %v739_v12 = vpop.xlane.xlu1 %738  ;;  %820 = vadd.xlane.f32.xlu0 %v819_v11 }
 0x232   : > { %v1474_v13 = vsub.f32 %v1404_v22, %v775_v9  ;;  %v776_v14 = vmul.f32 0.03125, %v739_v12  ;;  %v805_v15 = vmul.f32 %v1469_v8, %v1469_v8 }
 0x233   : > { %v742_v17 = vpop.xlane.xlu0 %741 }
 0x234   : > { %v1479_v18 = vsub.f32 %v1402_v21, %v776_v14  ;;  %v777_v16 = vmul.f32 0.03125, %v742_v17  ;;  %v825_v19 = vsel %vm528_vm1, %v805_v15, 0.0  ;;  %v807_v20 = vmul.f32 %v1474_v13, %v1474_v13 }
 0x235   : > { %v745_v23 = vpop.xlane.xlu1 %744  ;;  %826 = vadd.xlane.f32.xlu0 %v825_v19 }
 0x236   : > { %v1485_v24 = vsub.f32 %v1412_v28, %v777_v16  ;;  %v778_v22 = vmul.f32 0.03125, %v745_v23  ;;  %v808_v25 = vmul.f32 %v1479_v18, %v1479_v18  ;;  %v831_v29 = vsel %vm528_vm1, %v807_v20, 0.0 }
 0x237   : > { %v748_v26 = vpop.xlane.xlu0 %747 }
 0x238   : > { %v1491_v21 = vsub.f32 %v1410_v27, %v778_v22  ;;  %v779_v30 = vmul.f32 0.03125, %v748_v26  ;;  %v834_v31 = vsel %vm528_vm1, %v808_v25, 0.0  ;;  %v809_v32 = vmul.f32 %v1485_v24, %v1485_v24 }
 0x239   : > { %835 = vadd.xlane.f32.xlu1 %v834_v31  ;;  %v751_v35 = vpop.xlane.xlu1 %750  ;;  %832 = vadd.xlane.f32.xlu0 %v831_v29 }
 0x23a   : > { %v1497_v28 = vsub.f32 %v1420_v34, %v779_v30  ;;  %v780_v36 = vmul.f32 0.03125, %v751_v35  ;;  %v810_v37 = vmul.f32 %v1491_v21, %v1491_v21  ;;  %v837_v27 = vsel %vm528_vm1, %v809_v32, 0.0 }
 0x23b   : > { %v754_v38 = vpop.xlane.xlu0 %753 }
 0x23c   : > { %v1503_v41 = vsub.f32 %v1418_v33, %v780_v36  ;;  %v781_v42 = vmul.f32 0.03125, %v754_v38  ;;  %v840_v43 = vsel %vm528_vm1, %v810_v37, 0.0  ;;  %v811_v44 = vmul.f32 %v1497_v28, %v1497_v28 }
 0x23d   : > { %841 = vadd.xlane.f32.xlu1 %v840_v43  ;;  %v757_v47 = vpop.xlane.xlu1 %756  ;;  %838 = vadd.xlane.f32.xlu0 %v837_v27 }
 0x23e   : > { %v1509_v34 = vsub.f32 %v1428_v40, %v781_v42  ;;  %v782_v48 = vmul.f32 0.03125, %v757_v47  ;;  %v812_v49 = vmul.f32 %v1503_v41, %v1503_v41  ;;  %v843_v33 = vsel %vm528_vm1, %v811_v44, 0.0  ;;  %v1551_v47 = vld [vmem:[%s1653_s5] ss:$0 sm:$0xff] }
 0x23f   : > { %v760_v50 = vpop.xlane.xlu0 %759 }
 0x240   : > { %v1515_v53 = vsub.f32 %v1426_v39, %v782_v48  ;;  %v783_v54 = vmul.f32 0.03125, %v760_v50  ;;  %v846_v55 = vsel %vm528_vm1, %v812_v49, 0.0  ;;  %v813_v56 = vmul.f32 %v1509_v34, %v1509_v34 }
 0x241   : > { %847 = vadd.xlane.f32.xlu1 %v846_v55  ;;  %v763_v57 = vpop.xlane.xlu1 %762  ;;  %844 = vadd.xlane.f32.xlu0 %v843_v33  ;;  %v1557_v33 = vld [vmem:[%s1654_s6] ss:$0 sm:$0xff] }
 0x242   : > { %v1521_v40 = vsub.f32 %v1436_v46, %v783_v54  ;;  %v784_v59 = vmul.f32 0.03125, %v763_v57  ;;  %v814_v60 = vmul.f32 %v1515_v53, %v1515_v53  ;;  %v849_v39 = vsel %vm528_vm1, %v813_v56, 0.0 }
 0x243   : > { %v766_v61 = vpop.xlane.xlu0 %765 }
 0x244   : > { %v1527_v62 = vsub.f32 %v1434_v45, %v784_v59  ;;  %v785_v63 = vmul.f32 0.03125, %v766_v61  ;;  %v852_v2 = vsel %vm528_vm1, %v814_v60, 0.0  ;;  %v815_v3 = vmul.f32 %v1521_v40, %v1521_v40 }
 0x245   : > { %853 = vadd.xlane.f32.xlu1 %v852_v2  ;;  %v769_v4 = vpop.xlane.xlu1 %768  ;;  %850 = vadd.xlane.f32.xlu0 %v849_v39 }
 0x246   : > { %v1533_v46 = vsub.f32 %v1444_v52, %v785_v63  ;;  %v786_v5 = vmul.f32 0.03125, %v769_v4  ;;  %v816_v6 = vmul.f32 %v1527_v62, %v1527_v62  ;;  %v855_v9 = vsel %vm528_vm1, %v815_v3, 0.0 }
 0x248   : > { %v1538_v7 = vsub.f32 %v1442_v51, %v786_v5  ;;  %v858_v45 = vsel %vm528_vm1, %v816_v6, 0.0  ;;  %v817_v10 = vmul.f32 %v1533_v46, %v1533_v46 }
 0x249   : > { %859 = vadd.xlane.f32.xlu1 %v858_v45  ;;  %856 = vadd.xlane.f32.xlu0 %v855_v9 }
 0x24a   : > { %v818_v52 = vmul.f32 %v1538_v7, %v1538_v7  ;;  %v861_v12 = vsel %vm528_vm1, %v817_v10, 0.0 }
 0x24c   : > { %v864_v11 = vsel %vm528_vm1, %v818_v52, 0.0 }
 0x24d   : > { %865 = vadd.xlane.f32.xlu1 %v864_v11  ;;  %862 = vadd.xlane.f32.xlu0 %v861_v12 }
 0x2b6   : > { %v824_v51 = vpop.xlane.xlu1 %823 }
 0x2b7   : > { %v868_v14 = vmul.f32 0.03125, %v824_v51 }
 0x2b9   : > { %v884_v15 = vadd.f32 1e-05, %v868_v14 }
 0x2ba   : > { %v830_v17 = vpop.xlane.xlu1 %829  ;;  %v821_v16 = vpop.xlane.xlu0 %820 }
 0x2bb   : > { %1218 = vrsqrt.f32 %v884_v15  ;;  %v870_v19 = vmul.f32 0.03125, %v830_v17  ;;  %v867_v20 = vmul.f32 0.03125, %v821_v16 }
 0x2bd   : > { %v886_v23 = vadd.f32 1e-05, %v870_v19  ;;  %v883_v22 = vadd.f32 1e-05, %v867_v20 }
 0x2be   : > { %v827_v25 = vpop.xlane.xlu0 %826 }
 0x2bf   : > { %1220 = vrsqrt.f32 %v886_v23  ;;  %v869_v26 = vmul.f32 0.03125, %v827_v25 }
 0x2c0   : > { %1222 = vrsqrt.f32 %v883_v22 }
 0x2c1   : > { %v885_v29 = vadd.f32 1e-05, %v869_v26 }
 0x2c2   : > { %v836_v30 = vpop.xlane.xlu1 %835  ;;  %v833_v31 = vpop.xlane.xlu0 %832 }
 0x2c3   : > { %1224 = vrsqrt.f32 %v885_v29  ;;  %v872_v32 = vmul.f32 0.03125, %v836_v30  ;;  %v871_v35 = vmul.f32 0.03125, %v833_v31 }
 0x2c5   : > { %v888_v36 = vadd.f32 1e-05, %v872_v32  ;;  %v887_v37 = vadd.f32 1e-05, %v871_v35 }
 0x2c6   : > { %v842_v38 = vpop.xlane.xlu1 %841  ;;  %v839_v27 = vpop.xlane.xlu0 %838 }
 0x2c7   : > { %1226 = vrsqrt.f32 %v888_v36  ;;  %v874_v42 = vmul.f32 0.03125, %v842_v38  ;;  %v873_v43 = vmul.f32 0.03125, %v839_v27 }
 0x2c8   : > { %v1219_v44 = vpop.eup %1218  ;;  %1228 = vrsqrt.f32 %v887_v37 }
 0x2c9   : > { %v916_v48 = vmul.f32 %v1219_v44, %v1453_v58  ;;  %v890_v49 = vadd.f32 1e-05, %v874_v42  ;;  %v889_v50 = vadd.f32 1e-05, %v873_v43 }
 0x2ca   : > { %v848_v54 = vpop.xlane.xlu1 %847  ;;  %v845_v55 = vpop.xlane.xlu0 %844 }
 0x2cb   : > { %v939_v56 = vmul.f32 %v1551_v47, %v916_v48  ;;  %1230 = vrsqrt.f32 %v890_v49  ;;  %v876_v57 = vmul.f32 0.03125, %v848_v54  ;;  %v875_v59 = vmul.f32 0.03125, %v845_v55 }
 0x2cc   : > { %v1221_v60 = vpop.eup %1220  ;;  %1232 = vrsqrt.f32 %v889_v50 }
 0x2cd   : > { %v1223_v61 = vpop.eup %1222  ;;  %v962_v58 = vadd.f32 %v1557_v33, %v939_v56  ;;  %v918_v39 = vmul.f32 %v1221_v60, %v1458_v0  ;;  %v892_v63 = vadd.f32 1e-05, %v876_v57  ;;  %v891_v2 = vadd.f32 1e-05, %v875_v59 }
 0x2ce   : > { %v915_v3 = vmul.f32 %v1223_v61, %v1461_v1  ;;  %v854_v4 = vpop.xlane.xlu1 %853  ;;  %v851_v5 = vpop.xlane.xlu0 %850 }
 0x2cf   : > { %v978_v6 = vmax.f32 %v962_v58, 0.0  ;;  %v941_v45 = vmul.f32 %v1551_v47, %v918_v39  ;;  %1234 = vrsqrt.f32 %v892_v63  ;;  %v878_v9 = vmul.f32 0.03125, %v854_v4 }
 0x2d0   : > { %v1225_v10 = vpop.eup %1224  ;;  %v938_v0 = vmul.f32 %v1551_v47, %v915_v3  ;;  %1236 = vrsqrt.f32 %v891_v2  ;;  %v877_v52 = vmul.f32 0.03125, %v851_v5 }
 0x2d1   : > { %994 = vst.msk [vmem:[%s1567_s10 + $0x8] sm:$0xff] %vm528_vm1, %v978_v6  ;;  %v964_v11 = vadd.f32 %v1557_v33, %v941_v45  ;;  %v917_v12 = vmul.f32 %v1225_v10, %v1469_v8  ;;  %v894_v1 = vadd.f32 1e-05, %v878_v9 }
 0x2d2   : > { %v961_v51 = vadd.f32 %v1557_v33, %v938_v0  ;;  %v893_v14 = vadd.f32 1e-05, %v877_v52  ;;  %v860_v15 = vpop.xlane.xlu1 %859  ;;  %v857_v17 = vpop.xlane.xlu0 %856 }
 0x2d3   : > { %v980_v16 = vmax.f32 %v964_v11, 0.0  ;;  %v940_v19 = vmul.f32 %v1551_v47, %v917_v12  ;;  %1238 = vrsqrt.f32 %v894_v1  ;;  %v880_v20 = vmul.f32 0.03125, %v860_v15 }
 0x2d4   : > { %v1227_v23 = vpop.eup %1226  ;;  %v977_v22 = vmax.f32 %v961_v51, 0.0  ;;  %1240 = vrsqrt.f32 %v893_v14  ;;  %v879_v25 = vmul.f32 0.03125, %v857_v17 }
 0x2d5   : > { %v1229_v26 = vpop.eup %1228  ;;  %996 = vst.msk [vmem:[%s1567_s10 + $0x18] sm:$0xff] %vm528_vm1, %v980_v16  ;;  %v963_v8 = vadd.f32 %v1557_v33, %v940_v19  ;;  %v920_v29 = vmul.f32 %v1227_v23, %v1479_v18  ;;  %v896_v30 = vadd.f32 1e-05, %v880_v20 }
 0x2d6   : > { %993 = vst.msk [vmem:[%s1567_s10] sm:$0xff] %vm528_vm1, %v977_v22  ;;  %v919_v31 = vmul.f32 %v1229_v26, %v1474_v13  ;;  %v895_v32 = vadd.f32 1e-05, %v879_v25  ;;  %v866_v35 = vpop.xlane.xlu1 %865  ;;  %v863_v36 = vpop.xlane.xlu0 %862 }
 0x2d7   : > { %v979_v37 = vmax.f32 %v963_v8, 0.0  ;;  %v943_v38 = vmul.f32 %v1551_v47, %v920_v29  ;;  %1242 = vrsqrt.f32 %v896_v30  ;;  %v882_v27 = vmul.f32 0.03125, %v866_v35 }
 0x2d8   : > { %v1231_v42 = vpop.eup %1230  ;;  %v942_v43 = vmul.f32 %v1551_v47, %v919_v31  ;;  %1244 = vrsqrt.f32 %v895_v32  ;;  %v881_v44 = vmul.f32 0.03125, %v863_v36 }
 0x2d9   : > { %v1233_v18 = vpop.eup %1232  ;;  %995 = vst.msk [vmem:[%s1567_s10 + $0x10] sm:$0xff] %vm528_vm1, %v979_v37  ;;  %v966_v48 = vadd.f32 %v1557_v33, %v943_v38  ;;  %v922_v13 = vmul.f32 %v1231_v42, %v1491_v21  ;;  %v898_v49 = vadd.f32 1e-05, %v882_v27 }
 0x2da   : > { %v965_v50 = vadd.f32 %v1557_v33, %v942_v43  ;;  %v921_v54 = vmul.f32 %v1233_v18, %v1485_v24  ;;  %v897_v55 = vadd.f32 1e-05, %v881_v44 }
 0x2db   : > { %v982_v56 = vmax.f32 %v966_v48, 0.0  ;;  %v945_v57 = vmul.f32 %v1551_v47, %v922_v13  ;;  %1246 = vrsqrt.f32 %v898_v49 }
 0x2dc   : > { %v1235_v59 = vpop.eup %1234  ;;  %v981_v60 = vmax.f32 %v965_v50, 0.0  ;;  %v944_v61 = vmul.f32 %v1551_v47, %v921_v54  ;;  %1248 = vrsqrt.f32 %v897_v55 }
 0x2dd   : > { %v1237_v58 = vpop.eup %1236  ;;  %998 = vst.msk [vmem:[%s1567_s10 + $0x28] sm:$0xff] %vm528_vm1, %v982_v56  ;;  %v968_v21 = vadd.f32 %v1557_v33, %v945_v57  ;;  %v924_v39 = vmul.f32 %v1235_v59, %v1503_v41 }
 0x2de   : > { %997 = vst.msk [vmem:[%s1567_s10 + $0x20] sm:$0xff] %vm528_vm1, %v981_v60  ;;  %v967_v24 = vadd.f32 %v1557_v33, %v944_v61  ;;  %v923_v63 = vmul.f32 %v1237_v58, %v1497_v28 }
 0x2df   : > { %v984_v2 = vmax.f32 %v968_v21, 0.0  ;;  %v947_v3 = vmul.f32 %v1551_v47, %v924_v39 }
 0x2e0   : > { %v1239_v4 = vpop.eup %1238  ;;  %v983_v5 = vmax.f32 %v967_v24, 0.0  ;;  %v946_v6 = vmul.f32 %v1551_v47, %v923_v63 }
 0x2e1   : > { %v1241_v45 = vpop.eup %1240  ;;  %1000 = vst.msk [vmem:[%s1567_s10 + $0x38] sm:$0xff] %vm528_vm1, %v984_v2  ;;  %v970_v41 = vadd.f32 %v1557_v33, %v947_v3  ;;  %v926_v9 = vmul.f32 %v1239_v4, %v1515_v53 }
 0x2e2   : > { %999 = vst.msk [vmem:[%s1567_s10 + $0x30] sm:$0xff] %vm528_vm1, %v983_v5  ;;  %v969_v28 = vadd.f32 %v1557_v33, %v946_v6  ;;  %v925_v10 = vmul.f32 %v1241_v45, %v1509_v34 }
 0x2e3   : > { %v986_v0 = vmax.f32 %v970_v41, 0.0  ;;  %v949_v52 = vmul.f32 %v1551_v47, %v926_v9 }
 0x2e4   : > { %v1243_v11 = vpop.eup %1242  ;;  %v985_v12 = vmax.f32 %v969_v28, 0.0  ;;  %v948_v1 = vmul.f32 %v1551_v47, %v925_v10 }
 0x2e5   : > { %v1245_v51 = vpop.eup %1244  ;;  %1002 = vst.msk [vmem:[%s1567_s10 + $0x48] sm:$0xff] %vm528_vm1, %v986_v0  ;;  %v972_v53 = vadd.f32 %v1557_v33, %v949_v52  ;;  %v928_v14 = vmul.f32 %v1243_v11, %v1527_v62 }
 0x2e6   : > { %1001 = vst.msk [vmem:[%s1567_s10 + $0x40] sm:$0xff] %vm528_vm1, %v985_v12  ;;  %v971_v34 = vadd.f32 %v1557_v33, %v948_v1  ;;  %v927_v15 = vmul.f32 %v1245_v51, %v1521_v40 }
 0x2e7   : > { %v988_v17 = vmax.f32 %v972_v53, 0.0  ;;  %v951_v16 = vmul.f32 %v1551_v47, %v928_v14 }
 0x2e8   : > { %v1247_v19 = vpop.eup %1246  ;;  %v987_v20 = vmax.f32 %v971_v34, 0.0  ;;  %v950_v23 = vmul.f32 %v1551_v47, %v927_v15 }
 0x2e9   : > { %v1249_v22 = vpop.eup %1248  ;;  %1004 = vst.msk [vmem:[%s1567_s10 + $0x58] sm:$0xff] %vm528_vm1, %v988_v17  ;;  %v974_v62 = vadd.f32 %v1557_v33, %v951_v16  ;;  %v930_v25 = vmul.f32 %v1247_v19, %v1538_v7 }
 0x2ea   : > { %1003 = vst.msk [vmem:[%s1567_s10 + $0x50] sm:$0xff] %vm528_vm1, %v987_v20  ;;  %v973_v40 = vadd.f32 %v1557_v33, %v950_v23  ;;  %v929_v26 = vmul.f32 %v1249_v22, %v1533_v46 }
 0x2eb   : > { %v990_v8 = vmax.f32 %v974_v62, 0.0  ;;  %v953_v29 = vmul.f32 %v1551_v47, %v930_v25 }
 0x2ec   : > { %v989_v30 = vmax.f32 %v973_v40, 0.0  ;;  %v952_v31 = vmul.f32 %v1551_v47, %v929_v26 }
 0x2ed   : > { %1006 = vst.msk [vmem:[%s1567_s10 + $0x68] sm:$0xff] %vm528_vm1, %v990_v8  ;;  %v976_v32 = vadd.f32 %v1557_v33, %v953_v29 }
 0x2ee   : > { %1005 = vst.msk [vmem:[%s1567_s10 + $0x60] sm:$0xff] %vm528_vm1, %v989_v30  ;;  %v975_v7 = vadd.f32 %v1557_v33, %v952_v31 }
 0x2ef   : > { %v992_v35 = vmax.f32 %v976_v32, 0.0 }
 0x2f0   : > { %v991_v36 = vmax.f32 %v975_v7, 0.0 }
 0x2f1   : > { %1008 = vst.msk [vmem:[%s1567_s10 + $0x78] sm:$0xff] %vm528_vm1, %v992_v35 }
 0x2f2   : > { %1007 = vst.msk [vmem:[%s1567_s10 + $0x70] sm:$0xff] %vm528_vm1, %v991_v36 }
 0x2f3 PF: > { %s17_s24 = sadd.s32 1, %s1256_s24  }
 0x2f4   : > { %p14_p4 = scmp.ge.s32.totalorder %s17_s24, 4  }
 0x2f6   :  { %16 = sbr.rel (!%p14_p4) target bundleno = 1 (0x1), region = 78 }

</bundles_post_ra>
